<compile_context>
chip_gen: v7x
topology: tpu7x:2x2x1
jax: 0.10.0
libtpu: 0.0.40
codegen_flags: <defaults>
</compile_context>

<pallas_src>
import functools

import jax
import jax.numpy as jnp
from jax.experimental import pallas as pl
from jax.experimental.pallas import tpu as pltpu


LANE = 128  # lane width / output-N quantum


def _round_up(x, m):
    return ((x + m - 1) // m) * m


def _tpu_config():
    """Per-generation tiling defaults. Falls back gracefully if queries fail."""
    vmem_bytes = None
    try:
        vmem_bytes = int(getattr(pltpu.get_tpu_info(), "vmem_capacity_bytes"))
    except Exception:
        vmem_bytes = None
    try:
        kind = jax.devices()[0].device_kind.lower()
    except Exception:
        kind = ""

    if vmem_bytes is not None and vmem_bytes <= 80 * 1024 * 1024:
        # v7x-like: 64 MiB physical VMEM, 2 TensorCores per chip.
        #   - big steps (1024 rows) to amortize the ~0.35 us per-step overhead,
        #   - conservative VMEM cap with headroom,
        #   - force >= 2 M steps so the "parallel" axis shards over both TCs.
        return dict(tm=1024, vmem_cap=48 * 1024 * 1024, min_m_steps=2)
    if "v5 lite" in kind or "v5e" in kind or "v5lite" in kind:
        # v5e: ~0.8 TB/s HBM already hides step overhead at 512-row tiles;
        # bigger tiles only add regalloc pressure. 128 MiB physical VMEM.
        return dict(tm=512, vmem_cap=100 * 1024 * 1024, min_m_steps=1)
    if vmem_bytes is not None and vmem_bytes >= 100 * 1024 * 1024:
        # v6e / v5p class: 128 MiB VMEM, single TensorCore -> big steps, high cap.
        return dict(tm=1024, vmem_cap=100 * 1024 * 1024, min_m_steps=1)
    # Unknown hardware: conservative VMEM cap that is legal everywhere.
    return dict(tm=1024, vmem_cap=48 * 1024 * 1024, min_m_steps=1)


def _fused_head_kernel(x_ref, w_ref, b_ref, o_ref, *, compute_dtype):
    """One M-tile of  out = x @ w_fused + b_fused  (full-K, no accumulator).

    x_ref : [TM, K]     activations at native HBM dtype (cast in-kernel)
    w_ref : [K,  N_pad] fused pre-transposed weights (compute dtype), VMEM-resident
    b_ref : [1,  N_pad] fused bias, f32
    o_ref : [TM, N_pad] output
    """
    x = x_ref[...]
    if x.dtype != jnp.dtype(compute_dtype):
        # Cast on-chip: activations travel HBM->VMEM once at native width.
        x = x.astype(compute_dtype)
    acc = jnp.dot(x, w_ref[...], preferred_element_type=jnp.float32)
    o_ref[...] = (acc + b_ref[...]).astype(o_ref.dtype)


def fused_linear(x2d, w_fused, b_fused, *, compute_dtype=jnp.bfloat16,
                 out_dtype=jnp.float32, config=None):
    """y = x2d @ w_fused + b_fused  as one tiled, pipelined, full-K GEMM.

    x2d     : [M, K]      native dtype (no wrapper-side cast / pad)
    w_fused : [K, N_pad]  pre-transposed fused weights, N_pad % 128 == 0
    b_fused : [1, N_pad]  f32 fused bias
    Returns [M, N_pad] in out_dtype.
    """
    M, K = x2d.shape
    Kw, N_pad = w_fused.shape
    assert Kw == K, (Kw, K)
    assert N_pad % LANE == 0, N_pad

    cfg = config or _tpu_config()
    x_bytes = jnp.dtype(x2d.dtype).itemsize
    w_bytes = jnp.dtype(w_fused.dtype).itemsize
    o_bytes = jnp.dtype(out_dtype).itemsize

    # ---- M tile: multiple of 8, >= min_m_steps grid steps, shrink to fit VMEM. ----
    tm = min(cfg["tm"], _round_up(M, 8))
    if cfg["min_m_steps"] > 1 and M > 8:
        tm = min(tm, _round_up(pl.cdiv(M, cfg["min_m_steps"]), 8))
    tm = max(_round_up(tm, 8), 8)

    def vmem_need(tm_):
        return (2 * tm_ * K * x_bytes            # double-buffered activation tiles
                + 2 * K * N_pad * w_bytes        # fused weights (resident; 2x for safety)
                + 2 * tm_ * N_pad * o_bytes      # double-buffered output tiles
                + 2 * N_pad * 4                  # bias
                + (1 << 20))                     # slack

    while vmem_need(tm) > cfg["vmem_cap"] and tm > 8:
        tm = max(_round_up(tm // 2, 8), 8)
    # TODO(synk): if K ever grows so large that even tm=8 overflows VMEM, add a
    # K-tiled accumulator fallback; for realistic hidden sizes full-K always fits.

    n_m = pl.cdiv(M, tm)
    vmem_limit = int(min(max(vmem_need(tm) * 3 // 2, 16 * 1024 * 1024),
                         cfg["vmem_cap"]))

    kernel = functools.partial(_fused_head_kernel, compute_dtype=compute_dtype)
    return pl.pallas_call(
        kernel,
        out_shape=jax.ShapeDtypeStruct((M, N_pad), out_dtype),
        grid=(n_m,),
        in_specs=[
            pl.BlockSpec((tm, K), lambda i: (i, 0)),      # activations (native dtype)
            pl.BlockSpec((K, N_pad), lambda i: (0, 0)),   # fused weights, DMA'd once
            pl.BlockSpec((1, N_pad), lambda i: (0, 0)),   # fused bias
        ],
        out_specs=pl.BlockSpec((tm, N_pad), lambda i: (i, 0)),
        compiler_params=pltpu.CompilerParams(
            dimension_semantics=("parallel",),
            vmem_limit_bytes=vmem_limit,
        ),
    )(x2d, w_fused, b_fused)


class GLMMultiHeadParams:
    """Parameter container mirroring gLMMultiHead.__init__ (PyTorch layout),
    plus a fused / pre-transposed / lane-padded weight built once at init."""

    def __init__(self, key, hidden_size, num_pred, num_pc, predict_probs=True,
                 compute_dtype=jnp.bfloat16):
        self.hidden_size = hidden_size
        self.num_pred = num_pred
        self.num_pc = num_pc
        self.predict_probs = predict_probs
        self.compute_dtype = compute_dtype

        k1, k2, k3, k4 = jax.random.split(key, 4)
        out_dense = num_pc * num_pred
        scale = 1.0 / float(hidden_size) ** 0.5
        # PyTorch nn.Linear stores weight as [out_features, in_features].
        self.dense_w = jax.random.uniform(
            k1, (out_dense, hidden_size), jnp.float32, -scale, scale)
        self.dense_b = jax.random.uniform(
            k2, (out_dense,), jnp.float32, -scale, scale)
        if predict_probs:
            self.dense_prob_w = jax.random.uniform(
                k3, (num_pred, hidden_size), jnp.float32, -scale, scale)
            self.dense_prob_b = jax.random.uniform(
                k4, (num_pred,), jnp.float32, -scale, scale)
        else:
            self.dense_prob_w = None
            self.dense_prob_b = None

        # ---- Fused packing (done once, not per forward call) ------------------
        # Columns [0, num_pred*num_pc)         -> dense head
        # Columns [.., .. + num_pred)          -> dense_prob head (if enabled)
        # Remaining columns up to a 128-multiple -> zero padding (lane-dense out).
        # No K padding: the kernel uses a single full-K block.
        w_cols = [self.dense_w.T]
        b_cols = [self.dense_b]
        if predict_probs:
            w_cols.append(self.dense_prob_w.T)
            b_cols.append(self.dense_prob_b)
        w_t = jnp.concatenate(w_cols, axis=1)        # [H, n_total]
        b = jnp.concatenate(b_cols, axis=0)          # [n_total]
        self.n_total = int(w_t.shape[1])

        n_pad = max(_round_up(self.n_total, LANE), LANE)
        w_t = jnp.pad(w_t, ((0, 0), (0, n_pad - self.n_total)))
        b = jnp.pad(b, (0, n_pad - self.n_total))

        self.w_fused = w_t.astype(compute_dtype)     # [H, N_pad]
        self.b_fused = b.reshape(1, n_pad).astype(jnp.float32)
        self.n_pad = n_pad


def glm_multi_head_forward(params, features):
    """features: [batch, seq_len, hidden_size] -> (x, probs)."""
    B, S, H = features.shape
    x2d = features.reshape(B * S, H)                 # native dtype, no cast/pad here

    y = fused_linear(x2d, params.w_fused, params.b_fused,
                     compute_dtype=params.compute_dtype)   # [B*S, N_pad] f32

    n_dense = params.num_pred * params.num_pc
    x = y[:, :n_dense].reshape(B, S, params.num_pred, params.num_pc)
    if params.predict_probs:
        probs = y[:, n_dense:n_dense + params.num_pred].reshape(
            B, S, params.num_pred)
    else:
        probs = None
    return x, probs


if __name__ == "__main__":
    # Small config consistent with the module's forward.
    batch, seq_len, hidden_size = 2, 8, 32
    num_pred, num_pc = 4, 16

    key = jax.random.PRNGKey(0)
    kp, kx = jax.random.split(key)
    features = jax.random.normal(kx, (batch, seq_len, hidden_size), jnp.float32)

    # Plain-JAX reference (same math as PyTorch Linear), always in f32.
    def reference(p, feats):
        x2d = feats.reshape(-1, p.hidden_size)
        rx = (x2d @ p.dense_w.T + p.dense_b).reshape(
            batch, seq_len, p.num_pred, p.num_pc)
        rp = None
        if p.predict_probs:
            rp = (x2d @ p.dense_prob_w.T + p.dense_prob_b).reshape(
                batch, seq_len, p.num_pred)
        return rx, rp

    # 1) f32 compute path: exact check.
    params_f32 = GLMMultiHeadParams(kp, hidden_size, num_pred, num_pc,
                                    predict_probs=True,
                                    compute_dtype=jnp.float32)
    x, probs = glm_multi_head_forward(params_f32, features)
    jax.block_until_ready(x)
    jax.block_until_ready(probs)
    ref_x, ref_p = reference(params_f32, features)
    assert x.shape == (batch, seq_len, num_pred, num_pc)
    assert probs.shape == (batch, seq_len, num_pred)
    assert jnp.allclose(x, ref_x, atol=1e-5, rtol=1e-5)
    assert jnp.allclose(probs, ref_p, atol=1e-5, rtol=1e-5)

    # 2) bf16 compute path (fast MXU path): looser tolerance vs f32 ref.
    params_bf16 = GLMMultiHeadParams(kp, hidden_size, num_pred, num_pc,
                                     predict_probs=True,
                                     compute_dtype=jnp.bfloat16)
    xb, pb = glm_multi_head_forward(params_bf16, features)
    jax.block_until_ready(xb)
    jax.block_until_ready(pb)
    assert jnp.allclose(xb, ref_x, atol=5e-2, rtol=5e-2)
    assert jnp.allclose(pb, ref_p, atol=5e-2, rtol=5e-2)

    # 3) predict_probs=False path.
    params_np = GLMMultiHeadParams(kp, hidden_size, num_pred, num_pc,
                                   predict_probs=False,
                                   compute_dtype=jnp.float32)
    xn, pn = glm_multi_head_forward(params_np, features)
    jax.block_until_ready(xn)
    ref_xn, _ = reference(params_np, features)
    assert pn is None
    assert jnp.allclose(xn, ref_xn, atol=1e-5, rtol=1e-5)

    print("KERNEL_OK")
</pallas_src>

<mosaic_0001>
module attributes {stable_mosaic.version = 11 : i64} {
  func.func @_fused_head_kernel(%arg0: i32, %arg1: memref<16x32xf32, #tpu.memory_space<vmem>>, %arg2: memref<32x128xf32, #tpu.memory_space<vmem>>, %arg3: memref<1x128xf32, #tpu.memory_space<vmem>>, %arg4: memref<16x128xf32, #tpu.memory_space<vmem>>) attributes {dimension_semantics = [#tpu.dimension_semantics<parallel>], iteration_bounds = array<i64: 1>, scalar_prefetch = 0 : i64, scratch_operands = 0 : i64, tpu.core_type = #tpu.core_type<tc>, window_params = [{transform_indices = @transform_0, window_bounds = array<i64: 16, 32>}, {pipeline_mode = #tpu.pipeline_mode<synchronous>, transform_indices = @transform_1, window_bounds = array<i64: 32, 128>}, {pipeline_mode = #tpu.pipeline_mode<synchronous>, transform_indices = @transform_2, window_bounds = array<i64: 1, 128>}, {transform_indices = @transform_3, window_bounds = array<i64: 16, 128>}]} {
    %c0 = arith.constant 0 : index
    %c0_0 = arith.constant 0 : index
    %0 = vector.load %arg1[%c0, %c0_0] : memref<16x32xf32, #tpu.memory_space<vmem>>, vector<16x32xf32>
    %c0_1 = arith.constant 0 : index
    %c0_2 = arith.constant 0 : index
    %1 = vector.load %arg2[%c0_1, %c0_2] : memref<32x128xf32, #tpu.memory_space<vmem>>, vector<32x128xf32>
    %cst = arith.constant dense<0.000000e+00> : vector<16x128xf32>
    %2 = tpu.matmul %0, %1, %cst {dimension_numbers = #tpu.dot_dimension_numbers<[1], [0], [0], [1], [0, 0, 1, 1], [], []>} : vector<16x32xf32>, vector<32x128xf32>, vector<16x128xf32> -> vector<16x128xf32>
    %c0_3 = arith.constant 0 : index
    %c0_4 = arith.constant 0 : index
    %3 = vector.load %arg3[%c0_3, %c0_4] : memref<1x128xf32, #tpu.memory_space<vmem>>, vector<1x128xf32>
    %4 = vector.broadcast %3 : vector<1x128xf32> to vector<16x128xf32>
    %5 = arith.addf %2, %4 : vector<16x128xf32>
    %c0_5 = arith.constant 0 : index
    %c0_6 = arith.constant 0 : index
    %6 = vector.load %arg4[%c0_5, %c0_6] : memref<16x128xf32, #tpu.memory_space<vmem>>, vector<16x128xf32>
    tpu.vector_store %arg4[%c0_5, %c0_6], %5 {strides = array<i32>} : memref<16x128xf32, #tpu.memory_space<vmem>>, vector<16x128xf32>,
    return
  }
  func.func @transform_0(%arg0: i32) -> (i32, i32) {
    %c0_i32 = arith.constant 0 : i32
    %c0_i32_0 = arith.constant 0 : i32
    return %arg0, %c0_i32 : i32, i32
  }
  func.func @transform_1(%arg0: i32) -> (i32, i32) {
    %c0_i32 = arith.constant 0 : i32
    %c0_i32_0 = arith.constant 0 : i32
    %c0_i32_1 = arith.constant 0 : i32
    return %c0_i32, %c0_i32_0 : i32, i32
  }
  func.func @transform_2(%arg0: i32) -> (i32, i32) {
    %c0_i32 = arith.constant 0 : i32
    %c0_i32_0 = arith.constant 0 : i32
    %c0_i32_1 = arith.constant 0 : i32
    return %c0_i32, %c0_i32_0 : i32, i32
  }
  func.func @transform_3(%arg0: i32) -> (i32, i32) {
    %c0_i32 = arith.constant 0 : i32
    %c0_i32_0 = arith.constant 0 : i32
    return %arg0, %c0_i32 : i32, i32
  }
}

</mosaic_0001>

<bundles_post_ra>
// kernel: tpu_custom_call.1
= control target key start
LH: loop header
LB: loop body
LE: loop exit
PB: predicated region body
PF: predicated region fallthrough
CT: control target
= control target key end

     0   :  { %8 = vsyncpa [#allocation3], 0  ;;  %s336_s0 = inlined_call_operand.hbm [shape: f32[16,32], index: 0, kind: input, shape index: {}]   ;;  %s337_s1 = inlined_call_operand.hbm [shape: f32[32,128], index: 1, kind: input, shape index: {}]   ;;  %s338_s2 = inlined_call_operand.vmem [shape: f32[1,128], index: 2, kind: input, shape index: {}]   ;;  %s339_s3 = inlined_call_operand.hbm [shape: f32[16,128], index: 3, kind: output, shape index: {}]  }
   0x1   :  { %9 = vsyncpa [#allocation6], 0 }
   0x2   :  { %10 = vsyncpa [#allocation4], 0  ;;  %s263_s12 = smov [#allocation2]   ;;  %s191_s16 = scalar_lea.hbm %s336_s0, 256 }
   0x3   :  { %s16_s13 = sshll.u32 %s263_s12, 4  ;;  %p192_p0 = scmp.ne.s32.totalorder %s336_s0, %s191_s16  ;;  %s17_s13 = int_to_ptr.vmem [resolvable:$true] %s16_s13 }
   0x4   :  { %p195_p1 = scmp.lt.u32.totalorder %s191_s16, %s336_s0 }
   0x6   :  { %p197_p2 = pnand %p195_p1, %p192_p0 }
   0x8   :  { %200 = shalt.err (!%p197_p2)
}
   0x9   :  { %s201_s21 = scalar_lea.vmem %s17_s13, 256  ;;  %p206_p4 = scmp.lt.s32.totalorder %s17_s13, %s17_s13 }
   0xa   :  { %p202_p3 = scmp.ne.s32.totalorder %s17_s13, %s201_s21  ;;  %p207_p5 = scmp.lt.s32.totalorder %s201_s21, %s201_s21 }
   0xc   :  { %p208_p6 = por %p207_p5, %p206_p4 }
   0xe   :  { %p209_p7 = pnand %p208_p6, %p202_p3 }
  0x10   :  { %212 = shalt.err (!%p209_p7)
}
  0x11   :  { %s264_s22 = smov 128   ;;  %s265_s23 = smov 8  }
  0x12   :  { %22 = dma.hbm_to_vmem [thread:$0]  %s336_s0, 256, %s17_s13, [#allocation3], %s264_s22, %s264_s22, %s265_s23  }
  0x13   :  { %s266_s26 = smov [#allocation5]   ;;  %s213_s30 = scalar_lea.hbm %s337_s1, 512 }
  0x14   :  { %s28_s27 = sshll.u32 %s266_s26, 4  ;;  %p214_p8 = scmp.ne.s32.totalorder %s337_s1, %s213_s30  ;;  %s29_s27 = int_to_ptr.vmem [resolvable:$true] %s28_s27 }
  0x15   :  { %p217_p9 = scmp.lt.u32.totalorder %s213_s30, %s337_s1 }
  0x17   :  { %p219_p10 = pnand %p217_p9, %p214_p8 }
  0x19   :  { %222 = shalt.err (!%p219_p10)
}
  0x1a   :  { %s223_s8 = scalar_lea.vmem %s29_s27, 512  ;;  %p228_p12 = scmp.lt.s32.totalorder %s29_s27, %s29_s27 }
  0x1b   :  { %p224_p11 = scmp.ne.s32.totalorder %s29_s27, %s223_s8  ;;  %p229_p13 = scmp.lt.s32.totalorder %s223_s8, %s223_s8 }
  0x1d   :  { %p230_p0 = por %p229_p13, %p228_p12 }
  0x1f   :  { %p231_p1 = pnand %p230_p0, %p224_p11 }
  0x21   :  { %234 = shalt.err (!%p231_p1)
}
  0x22   :  { %34 = dma.hbm_to_vmem [thread:$0]  %s337_s1, 512, %s29_s27, [#allocation6], %s264_s22, %s264_s22, %s265_s23  }
  0x23   :  { %257 = dma.done.wait [#allocation3], 256  }
  0x24   :  { %258 = vsyncadd [#allocation3], 4294967040 }
  0x25   :  { %259 = dma.done.wait [#allocation6], 512  }
  0x26   :  { %260 = vsyncadd [#allocation6], 4294966784  ;;  %vm56_vm0 = vcmask 261120   ;;  %v45_v0 = vld [vmem:[#allocation5] sm:$0xff]  ;;  %v46_v1 = vld [vmem:[#allocation5 + $0x8] sm:$0xff]  ;;  %s267_s11 = smov [#allocation7]  }
  0x27   :  { %v47_v2 = vld [vmem:[#allocation5 + $0x10] sm:$0xff]  ;;  %v178_v3 = vpack.c.bf16 %v46_v1, %v45_v0  ;;  %v48_v4 = vld [vmem:[#allocation5 + $0x18] sm:$0xff]  ;;  %s145_s12 = sshll.u32 %s267_s11, 4  ;;  %s146_s12 = int_to_ptr.vmem [resolvable:$true] %s145_s12 }
  0x28   :  { %v43_v5 = vld [vmem:[#allocation2] sm:$0xff]  ;;  %v182_v6 = vpack.c.bf16 %v48_v4, %v47_v2  ;;  %v44_v7 = vld [vmem:[#allocation2 + $0x8] sm:$0xff]  ;;  %s235_s13 = scalar_lea.vmem %s146_s12, 256  ;;  %p240_p3 = scmp.lt.s32.totalorder %s146_s12, %s146_s12 }
  0x29   :  { %175 = vmatprep.mubr.msk.f32.mxu0 %vm56_vm0, %v43_v5  ;;  %179 = vmatprep.subr.bf16.mxu0 %v178_v3  ;;  %v158_v8 = vld [vmem:[%s338_s2] ss:$0 sm:$0xff]  ;;  %p236_p2 = scmp.ne.s32.totalorder %s146_s12, %s235_s13  ;;  %p241_p4 = scmp.lt.s32.totalorder %s235_s13, %s235_s13 }
  0x2a   :  { %181 = vmatpush3.bf16.msra.mxu0 %v178_v3 }
  0x2b   :  { %183 = vmatprep.subr.bf16.mxu0 %v182_v6  ;;  %p242_p5 = por %p241_p4, %p240_p3 }
  0x2d   :  { %p243_p6 = pnand %p242_p5, %p236_p2 }
  0x2e   :  { %185 = vmatpush3.bf16.msra.mxu0 %v182_v6 }
  0x31   :  { %176 = vmatmul.mubr.msk.f32.vlgmr.msra.gmra.mrb[0].mxu0 %vm56_vm0, %v44_v7 }
 0x104   :  { %v177_v9 = vpop.f32.mrb[0].mxu0 }
 0x105   :  { %v135_v10 = vadd.f32 %v177_v9, %v158_v8  ;;  %v129_v11 = vpop.f32.mrb[1].mxu0 }
 0x106   :  { %v130_v12 = vadd.f32 %v158_v8, %v129_v11 }
 0x107   :  { %139 = vst [vmem:[#allocation7 + $0x8] sm:$0xff] %v135_v10 }
 0x108   :  { %138 = vst [vmem:[#allocation7] sm:$0xff] %v130_v12 }
 0x109   :  { %246 = shalt.err (!%p243_p6)
}
 0x10a   :  { %s247_s2 = scalar_lea.hbm %s339_s3, 256 }
 0x10b   :  { %p248_p7 = scmp.ne.s32.totalorder %s339_s3, %s247_s2  ;;  %p251_p8 = scmp.lt.u32.totalorder %s247_s2, %s339_s3 }
 0x10d   :  { %p253_p9 = pnand %p251_p8, %p248_p7 }
 0x10f   :  { %256 = shalt.err (!%p253_p9)
}
 0x110   :  { %151 = dma.vmem_to_hbm [thread:$0]  %s146_s12, 256, %s339_s3, [#allocation4], %s264_s22, %s264_s22, %s265_s23  }
 0x111   :  { %261 = dma.done.wait [#allocation4], 256  }
 0x112   :  { %262 = vsyncadd [#allocation4], 4294967040 }
 0x113   :  { %155 = vsyncpa [#allocation3], 1 }
 0x114   :  { %156 = vsyncpa [#allocation6], 1 }
 0x115   :  { %157 = vsyncpa [#allocation4], 1 }

</bundles_post_ra>
